<compile_context>
chip_gen: v7x
topology: tpu7x:2x2x1
jax: 0.10.0
libtpu: 0.0.40
codegen_flags: <defaults>
</compile_context>

<pallas_src>
import numbers

import jax
import jax.numpy as jnp
from jax.experimental import pallas as pl
from jax.experimental.pallas import tpu as pltpu


def _normalize_size(size):
    if isinstance(size, numbers.Number):
        return (int(size), int(size))
    if isinstance(size, (tuple, list)) and len(size) == 1:
        return (int(size[0]), int(size[0]))
    if len(size) != 2:
        raise ValueError("Please provide only two dimensions (h, w) for size.")
    return (int(size[0]), int(size[1]))


def _crop_offsets(H, W, crop_h, crop_w, margin_w):
    x11 = (W - crop_w - 2 * margin_w) // 2
    x12 = x11 + margin_w
    x21 = x12 + crop_w
    y11 = (H - crop_h) // 2
    # torchvision center_crop uses python round() (banker's rounding on .5)
    ct = int(round((H - crop_h) / 2.0))
    cl = int(round((W - crop_w) / 2.0))
    return x11, x21, y11, ct, cl


def _make_crop_kernel(y11, x11, x21, ct, cl, crop_h, crop_w, margin_w):
    # Static offsets are closed over; every slice below is a compile-time
    # constant, so reads/writes are cheap ref-view accesses (no full-block load).
    def kernel(x_ref, sides_ref, center_ref):
        sides_ref[:, :, 0:margin_w] = x_ref[:, y11:y11 + crop_h, x11:x11 + margin_w]
        sides_ref[:, :, margin_w:2 * margin_w] = x_ref[:, y11:y11 + crop_h, x21:x21 + margin_w]
        center_ref[...] = x_ref[:, ct:ct + crop_h, cl:cl + crop_w]
    return kernel


def two_hori_crop(x, size, margin_w):
    """Pallas implementation of TwoHoriCrop.forward. x is NCHW.

    Returns (left, right, center) with shapes
      (N, C, crop_h, margin_w), (N, C, crop_h, margin_w), (N, C, crop_h, crop_w).
    """
    crop_h, crop_w = _normalize_size(size)
    margin_w = int(margin_w)
    N, C, H, W = x.shape

    if crop_w > W or crop_h > H:
        raise ValueError(
            f"Requested crop size {(crop_h, crop_w)} is bigger than input size {(H, W)}")
    if crop_w + margin_w > W:
        raise ValueError(
            f"Requested margin size {(0, margin_w)} + input {(crop_h, crop_w)} "
            f"is bigger than input size {(H, W)}")
    if crop_w + 2 * margin_w > W:
        # Reference slicing would silently wrap with a negative x11; raise instead.
        raise ValueError(
            f"crop_w + 2*margin_w = {crop_w + 2 * margin_w} exceeds image width {W}")
    if margin_w < 0:
        raise ValueError("margin_w must be non-negative")

    x11, x21, y11, ct, cl = _crop_offsets(H, W, crop_h, crop_w, margin_w)

    if margin_w == 0:
        # Zero-width side crops: avoid zero-sized Pallas output blocks.
        left = x[:, :, y11:y11 + crop_h, x11:x11]
        right = x[:, :, y11:y11 + crop_h, x21:x21]
        center = x[:, :, ct:ct + crop_h, cl:cl + crop_w]
        return left, right, center

    # Flatten N*C (free for contiguous NCHW) and tile it over a pipelined grid.
    NC = N * C
    x3 = x.reshape(NC, H, W)

    itemsize = jnp.dtype(x.dtype).itemsize
    per_chan_bytes = (H * W + crop_h * (crop_w + 2 * margin_w)) * itemsize
    budget = 4 * 1024 * 1024  # per pipeline stage; ~2x with double-buffering
    c_tile = max(1, min(NC, budget // max(per_chan_bytes, 1)))
    while NC % c_tile:        # keep the grid exact (no ragged trailing block)
        c_tile -= 1
    grid = (NC // c_tile,)

    kernel = _make_crop_kernel(y11, x11, x21, ct, cl, crop_h, crop_w, margin_w)

    out_shapes = (
        jax.ShapeDtypeStruct((NC, crop_h, 2 * margin_w), x.dtype),  # left|right fused
        jax.ShapeDtypeStruct((NC, crop_h, crop_w), x.dtype),        # center
    )

    sides, center = pl.pallas_call(
        kernel,
        out_shape=out_shapes,
        grid=grid,
        in_specs=[pl.BlockSpec((c_tile, H, W), lambda i: (i, 0, 0))],
        out_specs=(
            pl.BlockSpec((c_tile, crop_h, 2 * margin_w), lambda i: (i, 0, 0)),
            pl.BlockSpec((c_tile, crop_h, crop_w), lambda i: (i, 0, 0)),
        ),
        compiler_params=pltpu.CompilerParams(
            dimension_semantics=("parallel",),        # megacore sharding on v7x
            vmem_limit_bytes=32 * 1024 * 1024,        # safe on v5e/v6e/v7x
        ),
    )(x3)

    sides = sides.reshape(N, C, crop_h, 2 * margin_w)
    left = sides[:, :, :, :margin_w]
    right = sides[:, :, :, margin_w:]
    center = center.reshape(N, C, crop_h, crop_w)
    return left, right, center


if __name__ == "__main__":
    key = jax.random.PRNGKey(0)
    # Small NCHW input consistent with the module's forward.
    N, C, H, W = 2, 4, 16, 16
    x = jax.random.normal(key, (N, C, H, W), dtype=jnp.float32)

    size = (8, 6)       # (crop_h, crop_w)
    margin_w = 3

    left, right, center = two_hori_crop(x, size, margin_w)
    jax.block_until_ready((left, right, center))

    # Reference check with plain slicing (same math as the PyTorch module).
    crop_h, crop_w = size
    x11, x21, y11, ct, cl = _crop_offsets(H, W, crop_h, crop_w, margin_w)
    ref_left = x[:, :, y11:y11 + crop_h, x11:x11 + margin_w]
    ref_right = x[:, :, y11:y11 + crop_h, x21:x21 + margin_w]
    ref_center = x[:, :, ct:ct + crop_h, cl:cl + crop_w]

    assert left.shape == (N, C, crop_h, margin_w)
    assert right.shape == (N, C, crop_h, margin_w)
    assert center.shape == (N, C, crop_h, crop_w)
    assert jnp.array_equal(left, ref_left)
    assert jnp.array_equal(right, ref_right)
    assert jnp.array_equal(center, ref_center)

    print("KERNEL_OK")
</pallas_src>

<mosaic_0001>
module attributes {stable_mosaic.version = 11 : i64} {
  func.func @kernel(%arg0: i32, %arg1: memref<8x16x16xf32, #tpu.memory_space<vmem>>, %arg2: memref<8x8x6xf32, #tpu.memory_space<vmem>>, %arg3: memref<8x8x6xf32, #tpu.memory_space<vmem>>) attributes {dimension_semantics = [#tpu.dimension_semantics<parallel>], iteration_bounds = array<i64: 1>, scalar_prefetch = 0 : i64, scratch_operands = 0 : i64, tpu.core_type = #tpu.core_type<tc>, window_params = [{transform_indices = @transform_0, window_bounds = array<i64: 8, 16, 16>}, {transform_indices = @transform_1, window_bounds = array<i64: 8, 8, 6>}, {transform_indices = @transform_2, window_bounds = array<i64: 8, 8, 6>}]} {
    %c0 = arith.constant 0 : index
    %c4 = arith.constant 4 : index
    %c2 = arith.constant 2 : index
    %0 = vector.load %arg1[%c0, %c4, %c2] : memref<8x16x16xf32, #tpu.memory_space<vmem>>, vector<8x8x3xf32>
    %c0_0 = arith.constant 0 : index
    %c0_1 = arith.constant 0 : index
    %c0_2 = arith.constant 0 : index
    %1 = vector.load %arg2[%c0_0, %c0_1, %c0_2] : memref<8x8x6xf32, #tpu.memory_space<vmem>>, vector<8x8x3xf32>
    tpu.vector_store %arg2[%c0_0, %c0_1, %c0_2], %0 {strides = array<i32>} : memref<8x8x6xf32, #tpu.memory_space<vmem>>, vector<8x8x3xf32>,
    %c0_3 = arith.constant 0 : index
    %c4_4 = arith.constant 4 : index
    %c11 = arith.constant 11 : index
    %2 = vector.load %arg1[%c0_3, %c4_4, %c11] : memref<8x16x16xf32, #tpu.memory_space<vmem>>, vector<8x8x3xf32>
    %c0_5 = arith.constant 0 : index
    %c0_6 = arith.constant 0 : index
    %c3 = arith.constant 3 : index
    %3 = vector.load %arg2[%c0_5, %c0_6, %c3] : memref<8x8x6xf32, #tpu.memory_space<vmem>>, vector<8x8x3xf32>
    tpu.vector_store %arg2[%c0_5, %c0_6, %c3], %2 {strides = array<i32>} : memref<8x8x6xf32, #tpu.memory_space<vmem>>, vector<8x8x3xf32>,
    %c0_7 = arith.constant 0 : index
    %c4_8 = arith.constant 4 : index
    %c5 = arith.constant 5 : index
    %4 = vector.load %arg1[%c0_7, %c4_8, %c5] : memref<8x16x16xf32, #tpu.memory_space<vmem>>, vector<8x8x6xf32>
    %c0_9 = arith.constant 0 : index
    %c0_10 = arith.constant 0 : index
    %c0_11 = arith.constant 0 : index
    %5 = vector.load %arg3[%c0_9, %c0_10, %c0_11] : memref<8x8x6xf32, #tpu.memory_space<vmem>>, vector<8x8x6xf32>
    tpu.vector_store %arg3[%c0_9, %c0_10, %c0_11], %4 {strides = array<i32>} : memref<8x8x6xf32, #tpu.memory_space<vmem>>, vector<8x8x6xf32>,
    return
  }
  func.func @transform_0(%arg0: i32) -> (i32, i32, i32) {
    %c0_i32 = arith.constant 0 : i32
    %c0_i32_0 = arith.constant 0 : i32
    %c0_i32_1 = arith.constant 0 : i32
    return %arg0, %c0_i32, %c0_i32_0 : i32, i32, i32
  }
  func.func @transform_1(%arg0: i32) -> (i32, i32, i32) {
    %c0_i32 = arith.constant 0 : i32
    %c0_i32_0 = arith.constant 0 : i32
    %c0_i32_1 = arith.constant 0 : i32
    return %arg0, %c0_i32, %c0_i32_0 : i32, i32, i32
  }
  func.func @transform_2(%arg0: i32) -> (i32, i32, i32) {
    %c0_i32 = arith.constant 0 : i32
    %c0_i32_0 = arith.constant 0 : i32
    %c0_i32_1 = arith.constant 0 : i32
    return %arg0, %c0_i32, %c0_i32_0 : i32, i32, i32
  }
}

</mosaic_0001>

<bundles_post_ra>
// kernel: tpu_custom_call.1
= control target key start
LH: loop header
LB: loop body
LE: loop exit
PB: predicated region body
PF: predicated region fallthrough
CT: control target
= control target key end

     0   :  { %8 = vsyncpa [#allocation3], 0  ;;  %s210_s9 = smov [#allocation2]   ;;  %s339_s0 = inlined_call_operand.hbm [shape: f32[8,16,16], index: 0, kind: input, shape index: {}]   ;;  %s340_s1 = inlined_call_operand.vmem [shape: f32[8,8,6], index: 1, kind: output, shape index: {0}]   ;;  %s341_s2 = inlined_call_operand.vmem [shape: f32[8,8,6], index: 2, kind: output, shape index: {1}]  }
   0x1   :  { %s14_s10 = sshll.u32 %s210_s9, 4  ;;  %s186_s13 = scalar_lea.hbm %s339_s0, 2048  ;;  %s15_s10 = int_to_ptr.vmem [resolvable:$true] %s14_s10 }
   0x2   :  { %p187_p0 = scmp.ne.s32.totalorder %s339_s0, %s186_s13  ;;  %p190_p1 = scmp.lt.u32.totalorder %s186_s13, %s339_s0 }
   0x4   :  { %p192_p2 = pnand %p190_p1, %p187_p0 }
   0x6   :  { %195 = shalt.err (!%p192_p2)
}
   0x7   :  { %s196_s18 = scalar_lea.vmem %s15_s10, 2048  ;;  %p201_p4 = scmp.lt.s32.totalorder %s15_s10, %s15_s10 }
   0x8   :  { %p197_p3 = scmp.ne.s32.totalorder %s15_s10, %s196_s18  ;;  %p202_p5 = scmp.lt.s32.totalorder %s196_s18, %s196_s18 }
   0xa   :  { %p203_p6 = por %p202_p5, %p201_p4 }
   0xc   :  { %p204_p7 = pnand %p203_p6, %p197_p3 }
   0xe   :  { %207 = shalt.err (!%p204_p7)
}
   0xf   :  { %s211_s19 = smov 128   ;;  %s212_s20 = smov 8  }
  0x10   :  { %20 = dma.hbm_to_vmem [thread:$0]  %s339_s0, 2048, %s15_s10, [#allocation3], %s211_s19, %s211_s19, %s212_s20  }
  0x11   :  { %208 = dma.done.wait [#allocation3], 2048  }
  0x12   :  { %209 = vsyncadd [#allocation3], 4294965248  ;;  %v26_v0 = vld [vmem:[#allocation2 + $0x24] sm:$0xff]  ;;  %s213_s23 = smov 126   ;;  %v27_v2 = vld [vmem:[#allocation2 + $0x34] sm:$0xff]  ;;  %s214_s0 = smov 120  }
  0x13   :  { %v24_v1 = vld [vmem:[#allocation2 + $0x4] sm:$0xff]  ;;  %44 = vrot.lane.b32.xlu1 %v26_v0, %s213_s23  ;;  %v25_v3 = vld [vmem:[#allocation2 + $0x14] sm:$0xff]  ;;  %s215_s24 = smov 123   ;;  %vm64_vm0 = vcmask 23552   ;;  %vm113_vm1 = vcmask 48152   ;;  %vm162_vm2 = vcmask 48128  }
  0x14   :  { %40 = vrot.lane.b32.xlu0 %v24_v1, %s213_s23  ;;  %v29_v4 = vld [vmem:[#allocation2 + $0x54] sm:$0xff]  ;;  %v28_v5 = vld [vmem:[#allocation2 + $0x44] sm:$0xff] }
  0x15   :  { %v31_v6 = vld [vmem:[#allocation2 + $0x74] sm:$0xff]  ;;  %v30_v7 = vld [vmem:[#allocation2 + $0x64] sm:$0xff] }
  0x17   :  { %46 = vrot.lane.b32.xlu1 %v27_v2, %s213_s23 }
  0x18   :  { %42 = vrot.lane.b32.xlu0 %v25_v3, %s213_s23 }
  0x1b   :  { %50 = vrot.lane.b32.xlu1 %v29_v4, %s213_s23 }
  0x1c   :  { %48 = vrot.lane.b32.xlu0 %v28_v5, %s213_s23 }
  0x1f   :  { %54 = vrot.lane.b32.xlu1 %v31_v6, %s213_s23 }
  0x20   :  { %52 = vrot.lane.b32.xlu0 %v30_v7, %s213_s23 }
  0x23   :  { %91 = vrot.lane.b32.xlu1 %v25_v3, %s214_s0 }
  0x24   :  { %89 = vrot.lane.b32.xlu0 %v24_v1, %s214_s0 }
  0x27   :  { %95 = vrot.lane.b32.xlu1 %v27_v2, %s214_s0 }
  0x28   :  { %93 = vrot.lane.b32.xlu0 %v26_v0, %s214_s0 }
  0x2b   :  { %99 = vrot.lane.b32.xlu1 %v29_v4, %s214_s0 }
  0x2c   :  { %97 = vrot.lane.b32.xlu0 %v28_v5, %s214_s0 }
  0x2f   :  { %103 = vrot.lane.b32.xlu1 %v31_v6, %s214_s0 }
  0x30   :  { %101 = vrot.lane.b32.xlu0 %v30_v7, %s214_s0 }
  0x33   :  { %140 = vrot.lane.b32.xlu1 %v25_v3, %s215_s24 }
  0x34   :  { %138 = vrot.lane.b32.xlu0 %v24_v1, %s215_s24 }
  0x37   :  { %144 = vrot.lane.b32.xlu1 %v27_v2, %s215_s24 }
  0x38   :  { %142 = vrot.lane.b32.xlu0 %v26_v0, %s215_s24 }
  0x3b   :  { %148 = vrot.lane.b32.xlu1 %v29_v4, %s215_s24 }
  0x3c   :  { %146 = vrot.lane.b32.xlu0 %v28_v5, %s215_s24 }
  0x3f   :  { %152 = vrot.lane.b32.xlu1 %v31_v6, %s215_s24 }
  0x40   :  { %150 = vrot.lane.b32.xlu0 %v30_v7, %s215_s24 }
  0x85   :  { %v45_v8 = vpop.permute.xlu1 %44 }
  0x86   :  { %v41_v9 = vpop.permute.xlu0 %40  ;;  %67 = vst.msk [vmem:[%s340_s1 + $0x10] sm:$0xff] %vm64_vm0, %v45_v8 }
  0x87   :  { %65 = vst.msk [vmem:[%s340_s1] sm:$0xff] %vm64_vm0, %v41_v9 }
  0x89   :  { %v47_v10 = vpop.permute.xlu1 %46 }
  0x8a   :  { %v43_v11 = vpop.permute.xlu0 %42  ;;  %68 = vst.msk [vmem:[%s340_s1 + $0x18] sm:$0xff] %vm64_vm0, %v47_v10 }
  0x8b   :  { %66 = vst.msk [vmem:[%s340_s1 + $0x8] sm:$0xff] %vm64_vm0, %v43_v11 }
  0x8d   :  { %v51_v12 = vpop.permute.xlu1 %50 }
  0x8e   :  { %v49_v13 = vpop.permute.xlu0 %48  ;;  %70 = vst.msk [vmem:[%s340_s1 + $0x28] sm:$0xff] %vm64_vm0, %v51_v12 }
  0x8f   :  { %69 = vst.msk [vmem:[%s340_s1 + $0x20] sm:$0xff] %vm64_vm0, %v49_v13 }
  0x91   :  { %v55_v14 = vpop.permute.xlu1 %54 }
  0x92   :  { %v53_v15 = vpop.permute.xlu0 %52  ;;  %72 = vst.msk [vmem:[%s340_s1 + $0x38] sm:$0xff] %vm64_vm0, %v55_v14 }
  0x93   :  { %71 = vst.msk [vmem:[%s340_s1 + $0x30] sm:$0xff] %vm64_vm0, %v53_v15 }
  0x95   :  { %v92_v16 = vpop.permute.xlu1 %91 }
  0x96   :  { %v90_v17 = vpop.permute.xlu0 %89  ;;  %115 = vst.msk [vmem:[%s340_s1 + $0x8] sm:$0xff] %vm113_vm1, %v92_v16 }
  0x97   :  { %114 = vst.msk [vmem:[%s340_s1] sm:$0xff] %vm113_vm1, %v90_v17 }
  0x99   :  { %v96_v18 = vpop.permute.xlu1 %95 }
  0x9a   :  { %v94_v19 = vpop.permute.xlu0 %93  ;;  %117 = vst.msk [vmem:[%s340_s1 + $0x18] sm:$0xff] %vm113_vm1, %v96_v18 }
  0x9b   :  { %116 = vst.msk [vmem:[%s340_s1 + $0x10] sm:$0xff] %vm113_vm1, %v94_v19 }
  0x9d   :  { %v100_v20 = vpop.permute.xlu1 %99 }
  0x9e   :  { %v98_v21 = vpop.permute.xlu0 %97  ;;  %119 = vst.msk [vmem:[%s340_s1 + $0x28] sm:$0xff] %vm113_vm1, %v100_v20 }
  0x9f   :  { %118 = vst.msk [vmem:[%s340_s1 + $0x20] sm:$0xff] %vm113_vm1, %v98_v21 }
  0xa1   :  { %v104_v22 = vpop.permute.xlu1 %103 }
  0xa2   :  { %v102_v23 = vpop.permute.xlu0 %101  ;;  %121 = vst.msk [vmem:[%s340_s1 + $0x38] sm:$0xff] %vm113_vm1, %v104_v22 }
  0xa3   :  { %120 = vst.msk [vmem:[%s340_s1 + $0x30] sm:$0xff] %vm113_vm1, %v102_v23 }
  0xa5   :  { %v141_v24 = vpop.permute.xlu1 %140 }
  0xa6   :  { %v139_v25 = vpop.permute.xlu0 %138  ;;  %164 = vst.msk [vmem:[%s341_s2 + $0x8] sm:$0xff] %vm162_vm2, %v141_v24 }
  0xa7   :  { %163 = vst.msk [vmem:[%s341_s2] sm:$0xff] %vm162_vm2, %v139_v25 }
  0xa9   :  { %v145_v26 = vpop.permute.xlu1 %144 }
  0xaa   :  { %v143_v27 = vpop.permute.xlu0 %142  ;;  %166 = vst.msk [vmem:[%s341_s2 + $0x18] sm:$0xff] %vm162_vm2, %v145_v26 }
  0xab   :  { %165 = vst.msk [vmem:[%s341_s2 + $0x10] sm:$0xff] %vm162_vm2, %v143_v27 }
  0xad   :  { %v149_v28 = vpop.permute.xlu1 %148 }
  0xae   :  { %v147_v29 = vpop.permute.xlu0 %146  ;;  %168 = vst.msk [vmem:[%s341_s2 + $0x28] sm:$0xff] %vm162_vm2, %v149_v28 }
  0xaf   :  { %167 = vst.msk [vmem:[%s341_s2 + $0x20] sm:$0xff] %vm162_vm2, %v147_v29 }
  0xb1   :  { %v153_v30 = vpop.permute.xlu1 %152 }
  0xb2   :  { %v151_v31 = vpop.permute.xlu0 %150  ;;  %170 = vst.msk [vmem:[%s341_s2 + $0x38] sm:$0xff] %vm162_vm2, %v153_v30 }
  0xb3   :  { %169 = vst.msk [vmem:[%s341_s2 + $0x30] sm:$0xff] %vm162_vm2, %v151_v31 }
  0xb4   :  { %179 = vsyncpa [#allocation3], 1 }

</bundles_post_ra>
